<compile_context>
chip_gen: v7x
topology: tpu7x:2x2x1
jax: 0.10.0
libtpu: 0.0.40
codegen_flags: <defaults>
</compile_context>

<pallas_src>
import math

import jax
import jax.numpy as jnp
from jax import lax
from jax.experimental import pallas as pl
from jax.experimental.pallas import tpu as pltpu


def _softmax_last(x):
    # f32 in, f32 out; the divide goes to the EUP via the approximate reciprocal,
    # so rows sum to 1 only approximately.
    m = jnp.max(x, axis=-1, keepdims=True)
    e = jnp.exp(x - m)
    s = jnp.sum(e, axis=-1, keepdims=True)
    return e * pl.reciprocal(s, approx=True)


def make_sdpa_kernel(d_k, enc_dec_flag):
    scale = 1.0 / math.sqrt(d_k)   # python floats -> no captured traced constants
    neg = -1.0e9

    if enc_dec_flag:
        def kernel(w_ref, q_ref, k_ref, v_ref, mask_ref, adj_ref, dist_ref,
                   ctx_ref, attn_ref):
            # scale folded into Q: T*TQ*Dk multiplies instead of T*TQ*Lk.
            q = q_ref[...] * scale                      # (T, TQ, Dk) bf16
            k = k_ref[...]                              # (T, Lk, Dk) bf16
            v = v_ref[...]                              # (T, Lk, Dv) bf16
            masked = mask_ref[...] != 0                 # int compare, reused

            # scores = (Q/sqrt(d_k)) @ K^T: contract the last dims directly
            # (no explicit K transpose); bf16 operands into the MXU, f32 acc.
            scores = lax.dot_general(
                q, k, (((2,), (2,)), ((0,), (0,))),
                preferred_element_type=jnp.float32)
            scores = jnp.where(masked, neg, scores)
            scores = _softmax_last(scores)

            # 1x1 conv over channels [scores, dist, adj] == weighted sum + bias.
            w0 = w_ref[0]
            w1 = w_ref[1]
            w2 = w_ref[2]
            b = w_ref[3]
            ws = (w0 * scores
                  + w1 * dist_ref[...].astype(jnp.float32)
                  + w2 * adj_ref[...].astype(jnp.float32)
                  + b)
            ws = jnp.where(masked, neg, ws)
            attn = _softmax_last(ws)

            # TODO(synk): dropout implemented as eval-mode identity (deterministic kernel).
            attn_ref[...] = attn.astype(attn_ref.dtype)
            ctx_ref[...] = lax.dot_general(
                attn.astype(v.dtype), v, (((2,), (1,)), ((0,), (0,))),
                preferred_element_type=jnp.float32).astype(ctx_ref.dtype)
        return kernel

    def kernel(q_ref, k_ref, v_ref, mask_ref, ctx_ref, attn_ref):
        q = q_ref[...] * scale
        k = k_ref[...]
        v = v_ref[...]
        masked = mask_ref[...] != 0
        scores = lax.dot_general(
            q, k, (((2,), (2,)), ((0,), (0,))),
            preferred_element_type=jnp.float32)
        scores = jnp.where(masked, neg, scores)
        attn = _softmax_last(scores)
        attn_ref[...] = attn.astype(attn_ref.dtype)
        ctx_ref[...] = lax.dot_general(
            attn.astype(v.dtype), v, (((2,), (1,)), ((0,), (0,))),
            preferred_element_type=jnp.float32).astype(ctx_ref.dtype)
    return kernel


def _vmem_capacity_bytes():
    """Physical VMEM per TensorCore; conservative 64 MiB fallback (v7x size)."""
    try:
        info = pltpu.get_tpu_info()
        for name in ("vmem_capacity_bytes", "vmem_size_bytes", "vmem_bytes"):
            v = getattr(info, name, None)
            if v:
                return int(v)
    except Exception:
        pass
    return 64 * 1024 * 1024


def _pick_tiles(bh, lq, lk, dk, dv, enc_dec, out_bytes, budget):
    """Pick (T = heads per step, TQ = query rows per step) so the full VMEM
    working set (double-buffered DMA buffers + live f32 intermediates) fits
    `budget`, preferring tiles that leave >= 2 grid steps with an even total
    (megacore balance on v7x)."""
    def working_set(t, tq):
        bufs = 2 * t * (tq * dk + lk * dk + lk * dv)     # q/k/v bf16
        bufs += t * tq * lk                              # mask int8
        if enc_dec:
            bufs += 2 * 2 * t * tq * lk                  # adj + dist bf16
        bufs += out_bytes * t * tq * (dv + lk)           # ctx + attn outputs
        bufs *= 2                                        # double buffering
        # live f32 intermediates: scores / exp / ws / predicate (+ ctx acc)
        tmps = (5 if enc_dec else 3) * 4 * t * tq * lk + 4 * t * tq * dv
        return bufs + tmps

    # Lq tile candidates: full Lq, or divisors that are multiples of 32
    # (sublane-safe for packed int8 / bf16 blocks when TQ < Lq).
    tq_cands = sorted({lq} | {c for c in range(32, lq, 32) if lq % c == 0},
                      reverse=True)
    tq = next((c for c in tq_cands if working_set(1, c) <= budget), tq_cands[-1])

    divisors = [t for t in range(1, bh + 1) if bh % t == 0]
    fitting = [t for t in divisors if working_set(t, tq) <= budget] or [1]
    n_q = lq // tq
    multi = [t for t in fitting if (bh // t) * n_q >= 2]
    even = [t for t in multi if ((bh // t) * n_q) % 2 == 0]
    t_pick = max(even) if even else (max(multi) if multi else max(fitting))
    return t_pick, tq


def scaled_dot_product_attention(Q, K, V, attn_mask_col, adj_matrix=None,
                                 dist_matrix=None, conv_params=None,
                                 d_k=None, enc_dec_flag=True,
                                 out_dtype=jnp.float32):
    """Q:[B,H,Lq,Dk], K:[B,H,Lk,Dk], V:[B,H,Lk,Dv],
    attn_mask_col/adj/dist:[B,H,Lq,Lk] (mask truthy where masked),
    conv_params: (4,) f32 = [w_scores, w_dist, w_adj, bias].
    Returns (context [B,H,Lq,Dv], attn [B,H,Lq,Lk]) in `out_dtype`.
    Note: the softmax divide uses the approximate EUP reciprocal, so attention
    rows sum to 1 only approximately; pass out_dtype=jnp.bfloat16 to halve the
    dominant attn writeback stream when the consumer tolerates it."""
    B, H, Lq, Dk = Q.shape
    Lk = K.shape[2]
    Dv = V.shape[3]
    BH = B * H
    if d_k is None:
        d_k = Dk

    # Narrow HBM dtypes: the kernel is bandwidth bound on the (Lq, Lk) planes.
    q = Q.reshape(BH, Lq, Dk).astype(jnp.bfloat16)
    k = K.reshape(BH, Lk, Dk).astype(jnp.bfloat16)
    v = V.reshape(BH, Lk, Dv).astype(jnp.bfloat16)
    mask = attn_mask_col.reshape(BH, Lq, Lk).astype(jnp.int8)

    # VMEM sizing: scoped limit ~75% of physical (~96 MiB v5e/v6e, ~48 MiB v7x),
    # working-set budget ~50% of that (headroom for vregs / compiler scratch).
    out_bytes = jnp.dtype(out_dtype).itemsize
    vmem_limit = min(int(_vmem_capacity_bytes() * 0.75), 100 * 1024 * 1024)
    budget = vmem_limit // 2
    T, TQ = _pick_tiles(BH, Lq, Lk, Dk, Dv, enc_dec_flag, out_bytes, budget)
    grid = (BH // T, Lq // TQ)

    kernel = make_sdpa_kernel(d_k, enc_dec_flag)

    if enc_dec_flag:
        adj = adj_matrix.reshape(BH, Lq, Lk).astype(jnp.bfloat16)
        dist = dist_matrix.reshape(BH, Lq, Lk).astype(jnp.bfloat16)
        w = conv_params.astype(jnp.float32)

        qmap = lambda i, qi, w_ref: (i, qi, 0)    # scalar-prefetch ref is trailing
        kvmap = lambda i, qi, w_ref: (i, 0, 0)    # K/V resident across qi steps
        grid_spec = pltpu.PrefetchScalarGridSpec(
            num_scalar_prefetch=1,                # conv params -> SMEM
            grid=grid,
            in_specs=[
                pl.BlockSpec((T, TQ, Dk), qmap),    # Q
                pl.BlockSpec((T, Lk, Dk), kvmap),   # K
                pl.BlockSpec((T, Lk, Dv), kvmap),   # V
                pl.BlockSpec((T, TQ, Lk), qmap),    # mask (int8)
                pl.BlockSpec((T, TQ, Lk), qmap),    # adj  (bf16)
                pl.BlockSpec((T, TQ, Lk), qmap),    # dist (bf16)
            ],
            out_specs=[
                pl.BlockSpec((T, TQ, Dv), qmap),    # context
                pl.BlockSpec((T, TQ, Lk), qmap),    # attn
            ],
        )
        args = (w, q, k, v, mask, adj, dist)
    else:
        qmap = lambda i, qi: (i, qi, 0)
        kvmap = lambda i, qi: (i, 0, 0)
        grid_spec = pltpu.PrefetchScalarGridSpec(
            num_scalar_prefetch=0,
            grid=grid,
            in_specs=[
                pl.BlockSpec((T, TQ, Dk), qmap),
                pl.BlockSpec((T, Lk, Dk), kvmap),
                pl.BlockSpec((T, Lk, Dv), kvmap),
                pl.BlockSpec((T, TQ, Lk), qmap),
            ],
            out_specs=[
                pl.BlockSpec((T, TQ, Dv), qmap),
                pl.BlockSpec((T, TQ, Lk), qmap),
            ],
        )
        args = (q, k, v, mask)

    # TODO(synk): when Dv < 128 the ctx store is a masked partial store; a
    # lane-dense (..., T*Dv) output slab + wrapper-side transpose would fix it.
    ctx, attn = pl.pallas_call(
        kernel,
        out_shape=(
            jax.ShapeDtypeStruct((BH, Lq, Dv), out_dtype),
            jax.ShapeDtypeStruct((BH, Lq, Lk), out_dtype),
        ),
        grid_spec=grid_spec,
        compiler_params=pltpu.CompilerParams(
            dimension_semantics=("parallel", "parallel"),
            vmem_limit_bytes=vmem_limit),
    )(*args)

    return ctx.reshape(B, H, Lq, Dv), attn.reshape(B, H, Lq, Lk)


def reference(Q, K, V, mask, adj, dist, w, d_k, enc_dec_flag=True):
    scores = jnp.einsum("bhqd,bhkd->bhqk", Q, K) / math.sqrt(d_k)
    scores = jnp.where(mask, -1.0e9, scores)
    scores = jax.nn.softmax(scores, axis=-1)
    if enc_dec_flag:
        ws = w[0] * scores + w[1] * dist + w[2] * adj + w[3]
        ws = jnp.where(mask, -1.0e9, ws)
        attn = jax.nn.softmax(ws, axis=-1)
    else:
        attn = scores
    ctx = jnp.einsum("bhqk,bhkd->bhqd", attn, V)
    return ctx, attn


if __name__ == "__main__":
    B, H, L, Dk, Dv = 2, 4, 8, 32, 32
    key = jax.random.PRNGKey(0)
    kq, kk, kv, km, ka, kd, kw = jax.random.split(key, 7)

    Q = jax.random.normal(kq, (B, H, L, Dk), dtype=jnp.float32)
    K = jax.random.normal(kk, (B, H, L, Dk), dtype=jnp.float32)
    V = jax.random.normal(kv, (B, H, L, Dv), dtype=jnp.float32)
    attn_mask_col = jax.random.bernoulli(km, 0.2, (B, H, L, L))
    adj_matrix = jax.random.bernoulli(ka, 0.5, (B, H, L, L)).astype(jnp.float32)
    dist_matrix = jax.random.uniform(kd, (B, H, L, L), dtype=jnp.float32)

    # Deterministic 1x1 conv parameters: weight [1,3,1,1] flattened + bias [1]
    conv_params = jnp.concatenate([
        jax.random.normal(kw, (3,), dtype=jnp.float32) * 0.1,
        jnp.array([0.05], dtype=jnp.float32),
    ])

    # enc_dec path (conv over [scores, dist, adj] + re-masked softmax).
    ctx, attn = scaled_dot_product_attention(
        Q, K, V, attn_mask_col, adj_matrix, dist_matrix, conv_params,
        d_k=Dk, enc_dec_flag=True)
    jax.block_until_ready((ctx, attn))
    ctx_ref, attn_ref = reference(Q, K, V, attn_mask_col, adj_matrix,
                                  dist_matrix, conv_params, Dk, True)
    # bf16 matmul operands + folded scale + approx reciprocal -> loose tolerance.
    assert jnp.allclose(ctx, ctx_ref, atol=4e-2, rtol=4e-2), "ctx mismatch (enc_dec)"
    assert jnp.allclose(attn, attn_ref, atol=4e-2, rtol=4e-2), "attn mismatch (enc_dec)"

    # plain path (adj/dist/conv params never passed nor DMA'd).
    ctx2, attn2 = scaled_dot_product_attention(
        Q, K, V, attn_mask_col, d_k=Dk, enc_dec_flag=False)
    jax.block_until_ready((ctx2, attn2))
    ctx2_ref, attn2_ref = reference(Q, K, V, attn_mask_col, None, None,
                                    conv_params, Dk, False)
    assert jnp.allclose(ctx2, ctx2_ref, atol=4e-2, rtol=4e-2), "ctx mismatch (plain)"
    assert jnp.allclose(attn2, attn2_ref, atol=4e-2, rtol=4e-2), "attn mismatch (plain)"

    print("KERNEL_OK")
</pallas_src>

<mosaic_0001>
module attributes {stable_mosaic.version = 11 : i64} {
  func.func @kernel(%arg0: i32, %arg1: i32, %arg2: memref<4xf32, #tpu.memory_space<smem>>, %arg3: memref<4x8x32xbf16, #tpu.memory_space<vmem>>, %arg4: memref<4x8x32xbf16, #tpu.memory_space<vmem>>, %arg5: memref<4x8x32xbf16, #tpu.memory_space<vmem>>, %arg6: memref<4x8x8xi8, #tpu.memory_space<vmem>>, %arg7: memref<4x8x8xbf16, #tpu.memory_space<vmem>>, %arg8: memref<4x8x8xbf16, #tpu.memory_space<vmem>>, %arg9: memref<4x8x32xf32, #tpu.memory_space<vmem>>, %arg10: memref<4x8x8xf32, #tpu.memory_space<vmem>>) attributes {dimension_semantics = [#tpu.dimension_semantics<parallel>, #tpu.dimension_semantics<parallel>], iteration_bounds = array<i64: 2, 1>, scalar_prefetch = 1 : i64, scratch_operands = 0 : i64, tpu.core_type = #tpu.core_type<tc>, window_params = [{transform_indices = @transform_0, window_bounds = array<i64: 4, 8, 32>}, {transform_indices = @transform_1, window_bounds = array<i64: 4, 8, 32>}, {transform_indices = @transform_2, window_bounds = array<i64: 4, 8, 32>}, {transform_indices = @transform_3, window_bounds = array<i64: 4, 8, 8>}, {transform_indices = @transform_4, window_bounds = array<i64: 4, 8, 8>}, {transform_indices = @transform_5, window_bounds = array<i64: 4, 8, 8>}, {transform_indices = @transform_6, window_bounds = array<i64: 4, 8, 32>}, {transform_indices = @transform_7, window_bounds = array<i64: 4, 8, 8>}]} {
    %c0 = arith.constant 0 : index
    %c0_0 = arith.constant 0 : index
    %c0_1 = arith.constant 0 : index
    %0 = vector.load %arg3[%c0, %c0_0, %c0_1] : memref<4x8x32xbf16, #tpu.memory_space<vmem>>, vector<4x8x32xbf16>
    %cst = arith.constant 1.767580e-01 : bf16
    %1 = vector.broadcast %cst : bf16 to vector<4x8x32xbf16>
    %2 = arith.mulf %0, %1 : vector<4x8x32xbf16>
    %c0_2 = arith.constant 0 : index
    %c0_3 = arith.constant 0 : index
    %c0_4 = arith.constant 0 : index
    %3 = vector.load %arg4[%c0_2, %c0_3, %c0_4] : memref<4x8x32xbf16, #tpu.memory_space<vmem>>, vector<4x8x32xbf16>
    %c0_5 = arith.constant 0 : index
    %c0_6 = arith.constant 0 : index
    %c0_7 = arith.constant 0 : index
    %4 = vector.load %arg5[%c0_5, %c0_6, %c0_7] : memref<4x8x32xbf16, #tpu.memory_space<vmem>>, vector<4x8x32xbf16>
    %c0_8 = arith.constant 0 : index
    %c0_9 = arith.constant 0 : index
    %c0_10 = arith.constant 0 : index
    %5 = vector.load %arg6[%c0_8, %c0_9, %c0_10] : memref<4x8x8xi8, #tpu.memory_space<vmem>>, vector<4x8x8xi8>
    %c0_i8 = arith.constant 0 : i8
    %6 = vector.broadcast %c0_i8 : i8 to vector<4x8x8xi8>
    %7 = arith.cmpi ne, %5, %6 : vector<4x8x8xi8>
    %cst_11 = arith.constant dense<0.000000e+00> : vector<4x8x8xf32>
    %8 = tpu.matmul %2, %3, %cst_11 {dimension_numbers = #tpu.dot_dimension_numbers<[2], [2], [1], [1], [0, 0, 0, 1, 1, 1], [0], [0]>} : vector<4x8x32xbf16>, vector<4x8x32xbf16>, vector<4x8x8xf32> -> vector<4x8x8xf32>
    %cst_12 = arith.constant -1.000000e+09 : f32
    %9 = vector.broadcast %cst_12 : f32 to vector<4x8x8xf32>
    %10 = arith.select %7, %9, %8 : vector<4x8x8xi1>, vector<4x8x8xf32>
    %cst_13 = arith.constant dense<0xFF800000> : vector<4x8xf32>
    %11 = vector.multi_reduction <maximumf>, %10, %cst_13 [2] : vector<4x8x8xf32> to vector<4x8xf32>
    %12 = vector.shape_cast %11 : vector<4x8xf32> to vector<4x8x1xf32>
    %13 = vector.broadcast %12 : vector<4x8x1xf32> to vector<4x8x8xf32>
    %14 = arith.subf %10, %13 : vector<4x8x8xf32>
    %15 = math.exp %14 : vector<4x8x8xf32>
    %cst_14 = arith.constant dense<0.000000e+00> : vector<4x8xf32>
    %16 = vector.multi_reduction <add>, %15, %cst_14 [2] : vector<4x8x8xf32> to vector<4x8xf32>
    %17 = vector.shape_cast %16 : vector<4x8xf32> to vector<4x8x1xf32>
    %18 = tpu.reciprocal %17 {approx = true} : vector<4x8x1xf32> -> vector<4x8x1xf32>
    %19 = vector.broadcast %18 : vector<4x8x1xf32> to vector<4x8x8xf32>
    %20 = arith.mulf %15, %19 : vector<4x8x8xf32>
    %c0_15 = arith.constant 0 : index
    %21 = memref.load %arg2[%c0_15] : memref<4xf32, #tpu.memory_space<smem>>
    %c1 = arith.constant 1 : index
    %22 = memref.load %arg2[%c1] : memref<4xf32, #tpu.memory_space<smem>>
    %c2 = arith.constant 2 : index
    %23 = memref.load %arg2[%c2] : memref<4xf32, #tpu.memory_space<smem>>
    %c3 = arith.constant 3 : index
    %24 = memref.load %arg2[%c3] : memref<4xf32, #tpu.memory_space<smem>>
    %25 = vector.broadcast %21 : f32 to vector<4x8x8xf32>
    %26 = arith.mulf %25, %20 : vector<4x8x8xf32>
    %c0_16 = arith.constant 0 : index
    %c0_17 = arith.constant 0 : index
    %c0_18 = arith.constant 0 : index
    %27 = vector.load %arg8[%c0_16, %c0_17, %c0_18] : memref<4x8x8xbf16, #tpu.memory_space<vmem>>, vector<4x8x8xbf16>
    %28 = arith.extf %27 : vector<4x8x8xbf16> to vector<4x8x8xf32>
    %29 = vector.broadcast %22 : f32 to vector<4x8x8xf32>
    %30 = arith.mulf %29, %28 : vector<4x8x8xf32>
    %31 = arith.addf %26, %30 : vector<4x8x8xf32>
    %c0_19 = arith.constant 0 : index
    %c0_20 = arith.constant 0 : index
    %c0_21 = arith.constant 0 : index
    %32 = vector.load %arg7[%c0_19, %c0_20, %c0_21] : memref<4x8x8xbf16, #tpu.memory_space<vmem>>, vector<4x8x8xbf16>
    %33 = arith.extf %32 : vector<4x8x8xbf16> to vector<4x8x8xf32>
    %34 = vector.broadcast %23 : f32 to vector<4x8x8xf32>
    %35 = arith.mulf %34, %33 : vector<4x8x8xf32>
    %36 = arith.addf %31, %35 : vector<4x8x8xf32>
    %37 = vector.broadcast %24 : f32 to vector<4x8x8xf32>
    %38 = arith.addf %36, %37 : vector<4x8x8xf32>
    %cst_22 = arith.constant -1.000000e+09 : f32
    %39 = vector.broadcast %cst_22 : f32 to vector<4x8x8xf32>
    %40 = arith.select %7, %39, %38 : vector<4x8x8xi1>, vector<4x8x8xf32>
    %cst_23 = arith.constant dense<0xFF800000> : vector<4x8xf32>
    %41 = vector.multi_reduction <maximumf>, %40, %cst_23 [2] : vector<4x8x8xf32> to vector<4x8xf32>
    %42 = vector.shape_cast %41 : vector<4x8xf32> to vector<4x8x1xf32>
    %43 = vector.broadcast %42 : vector<4x8x1xf32> to vector<4x8x8xf32>
    %44 = arith.subf %40, %43 : vector<4x8x8xf32>
    %45 = math.exp %44 : vector<4x8x8xf32>
    %cst_24 = arith.constant dense<0.000000e+00> : vector<4x8xf32>
    %46 = vector.multi_reduction <add>, %45, %cst_24 [2] : vector<4x8x8xf32> to vector<4x8xf32>
    %47 = vector.shape_cast %46 : vector<4x8xf32> to vector<4x8x1xf32>
    %48 = tpu.reciprocal %47 {approx = true} : vector<4x8x1xf32> -> vector<4x8x1xf32>
    %49 = vector.broadcast %48 : vector<4x8x1xf32> to vector<4x8x8xf32>
    %50 = arith.mulf %45, %49 : vector<4x8x8xf32>
    %c0_25 = arith.constant 0 : index
    %c0_26 = arith.constant 0 : index
    %c0_27 = arith.constant 0 : index
    %51 = vector.load %arg10[%c0_25, %c0_26, %c0_27] : memref<4x8x8xf32, #tpu.memory_space<vmem>>, vector<4x8x8xf32>
    tpu.vector_store %arg10[%c0_25, %c0_26, %c0_27], %50 {strides = array<i32>} : memref<4x8x8xf32, #tpu.memory_space<vmem>>, vector<4x8x8xf32>,
    %52 = arith.truncf %50 : vector<4x8x8xf32> to vector<4x8x8xbf16>
    %cst_28 = arith.constant dense<0.000000e+00> : vector<4x8x32xf32>
    %53 = tpu.matmul %52, %4, %cst_28 {dimension_numbers = #tpu.dot_dimension_numbers<[2], [1], [1], [2], [0, 0, 0, 1, 1, 2], [0], [0]>} : vector<4x8x8xbf16>, vector<4x8x32xbf16>, vector<4x8x32xf32> -> vector<4x8x32xf32>
    %c0_29 = arith.constant 0 : index
    %c0_30 = arith.constant 0 : index
    %c0_31 = arith.constant 0 : index
    %54 = vector.load %arg9[%c0_29, %c0_30, %c0_31] : memref<4x8x32xf32, #tpu.memory_space<vmem>>, vector<4x8x32xf32>
    tpu.vector_store %arg9[%c0_29, %c0_30, %c0_31], %53 {strides = array<i32>} : memref<4x8x32xf32, #tpu.memory_space<vmem>>, vector<4x8x32xf32>,
    return
  }
  func.func @transform_0(%arg0: i32, %arg1: i32, %arg2: memref<4xf32, #tpu.memory_space<smem>>) -> (i32, i32, i32) {
    %c0_i32 = arith.constant 0 : i32
    %c0_i32_0 = arith.constant 0 : i32
    return %arg0, %arg1, %c0_i32 : i32, i32, i32
  }
  func.func @transform_1(%arg0: i32, %arg1: i32, %arg2: memref<4xf32, #tpu.memory_space<smem>>) -> (i32, i32, i32) {
    %c0_i32 = arith.constant 0 : i32
    %c0_i32_0 = arith.constant 0 : i32
    %c0_i32_1 = arith.constant 0 : i32
    return %arg0, %c0_i32, %c0_i32_0 : i32, i32, i32
  }
  func.func @transform_2(%arg0: i32, %arg1: i32, %arg2: memref<4xf32, #tpu.memory_space<smem>>) -> (i32, i32, i32) {
    %c0_i32 = arith.constant 0 : i32
    %c0_i32_0 = arith.constant 0 : i32
    %c0_i32_1 = arith.constant 0 : i32
    return %arg0, %c0_i32, %c0_i32_0 : i32, i32, i32
  }
  func.func @transform_3(%arg0: i32, %arg1: i32, %arg2: memref<4xf32, #tpu.memory_space<smem>>) -> (i32, i32, i32) {
    %c0_i32 = arith.constant 0 : i32
    %c0_i32_0 = arith.constant 0 : i32
    return %arg0, %arg1, %c0_i32 : i32, i32, i32
  }
  func.func @transform_4(%arg0: i32, %arg1: i32, %arg2: memref<4xf32, #tpu.memory_space<smem>>) -> (i32, i32, i32) {
    %c0_i32 = arith.constant 0 : i32
    %c0_i32_0 = arith.constant 0 : i32
    return %arg0, %arg1, %c0_i32 : i32, i32, i32
  }
  func.func @transform_5(%arg0: i32, %arg1: i32, %arg2: memref<4xf32, #tpu.memory_space<smem>>) -> (i32, i32, i32) {
    %c0_i32 = arith.constant 0 : i32
    %c0_i32_0 = arith.constant 0 : i32
    return %arg0, %arg1, %c0_i32 : i32, i32, i32
  }
  func.func @transform_6(%arg0: i32, %arg1: i32, %arg2: memref<4xf32, #tpu.memory_space<smem>>) -> (i32, i32, i32) {
    %c0_i32 = arith.constant 0 : i32
    %c0_i32_0 = arith.constant 0 : i32
    return %arg0, %arg1, %c0_i32 : i32, i32, i32
  }
  func.func @transform_7(%arg0: i32, %arg1: i32, %arg2: memref<4xf32, #tpu.memory_space<smem>>) -> (i32, i32, i32) {
    %c0_i32 = arith.constant 0 : i32
    %c0_i32_0 = arith.constant 0 : i32
    return %arg0, %arg1, %c0_i32 : i32, i32, i32
  }
}

</mosaic_0001>

<bundles_post_ra>
// kernel: tpu_custom_call.1
= control target key start
LH: loop header
LB: loop body
LE: loop exit
PB: predicated region body
PF: predicated region fallthrough
CT: control target
= control target key end

     0   :  { %s2625_s0 = inlined_call_operand.hbm [shape: f32[4], index: 0, kind: input, shape index: {}]   ;;  %s2626_s1 = inlined_call_operand.hbm [shape: bf16[8,8,32], index: 1, kind: input, shape index: {}]   ;;  %s2627_s2 = inlined_call_operand.hbm [shape: bf16[8,8,32], index: 2, kind: input, shape index: {}]   ;;  %s2628_s3 = inlined_call_operand.hbm [shape: bf16[8,8,32], index: 3, kind: input, shape index: {}]   ;;  %s2629_s4 = inlined_call_operand.hbm [shape: s8[8,8,8], index: 4, kind: input, shape index: {}]   ;;  %s2630_s5 = inlined_call_operand.hbm [shape: bf16[8,8,8], index: 5, kind: input, shape index: {}]   ;;  %s2631_s6 = inlined_call_operand.hbm [shape: bf16[8,8,8], index: 6, kind: input, shape index: {}]   ;;  %s2632_s7 = inlined_call_operand.hbm [shape: f32[8,8,32], index: 7, kind: output, shape index: {0}]   ;;  %s2633_s8 = inlined_call_operand.hbm [shape: f32[8,8,8], index: 8, kind: output, shape index: {1}]  }
   0x1   :  { %2647 = sst [smem:[#allocation31_spill]] %s2626_s1  ;;  %s1655_s29 = scalar_lea.hbm %s2625_s0, 16 }
   0x2   :  { %2648 = sst [smem:[#allocation32_spill]] %s2627_s2  ;;  %p1656_p0 = scmp.ne.s32.totalorder %s2625_s0, %s1655_s29 }
   0x3   :  { %2649 = sst [smem:[#allocation33_spill]] %s2632_s7  ;;  %p1659_p1 = scmp.lt.u32.totalorder %s1655_s29, %s2625_s0 }
   0x5   :  { %p1661_p2 = pnand %p1659_p1, %p1656_p0 }
   0x7   :  { %1664 = shalt.err (!%p1661_p2)  }
   0x8   :  { %s1975_s12 = smov [#allocation3]  }
   0x9   :  { %15 = dma.hbm_to_smem %s2625_s0, 16, %s1975_s12, [#allocation2] }
   0xa   :  { %1925 = dma.done.wait [#allocation2], 16 }
   0xb   :  { %1926 = vsyncadd [#allocation2], 4294967280 }
   0xc   :  { %17 = sfence }
   0xd   :  { %18 = vsyncpa [#allocation5], 0 }
   0xe   :  { %20 = vsyncpa [#allocation5 + $0x1], 0 }
   0xf   :  { %21 = vsyncpa [#allocation8], 0 }
  0x10   :  { %23 = vsyncpa [#allocation8 + $0x1], 0 }
  0x11   :  { %24 = vsyncpa [#allocation11], 0 }
  0x12   :  { %26 = vsyncpa [#allocation11 + $0x1], 0 }
  0x13   :  { %27 = vsyncpa [#allocation14], 0 }
  0x14   :  { %29 = vsyncpa [#allocation14 + $0x1], 0 }
  0x15   :  { %30 = vsyncpa [#allocation6], 0 }
  0x16   :  { %32 = vsyncpa [#allocation6 + $0x1], 0 }
  0x17   :  { %33 = vsyncpa [#allocation17], 0 }
  0x18   :  { %35 = vsyncpa [#allocation17 + $0x1], 0  ;;  %s2050_s15 = smov 0   ;;  %s2052_s16 = smov 0  }
  0x19   :  { %s2054_s0 = smov 0   ;;  %s2056_s17 = smov 0  }
  0x1a   :  { %s2058_s18 = smov 0   ;;  %s2060_s19 = smov 0  }
  0x1b LB: > { %2650 = sst [smem:[#allocation25_spill]] %s1953_s15  ;;  %s2081_s20 = sadd.s32 4294967295, %s1973_s19   ;;  %s1973_s19 = sphi %s2060_s19, %s41_s19   ;;  %s1969_s18 = sphi %s2058_s18, %s2689_s18   ;;  %s1965_s17 = sphi %s2056_s17, %s2688_s17   ;;  %s1961_s0 = sphi %s2054_s0, %s2687_s0   ;;  %s1957_s16 = sphi %s2052_s16, %s2691_s16   ;;  %s1953_s15 = sphi %s2050_s15, %s2690_s15  }
  0x1c   : > { %2651 = sst [smem:[#allocation26_spill]] %s1961_s0  ;;  %s1382_s21 = sadd.s32 4294967294, %s1973_s19  }
  0x1d   : > { %2652 = sst [smem:[#allocation27_spill]] %s1969_s18  ;;  %s53_s22 = sadd.s32 1, %s1969_s18 }
  0x1e   : > { %s62_s23 = sadd.s32 1, %s1961_s0  ;;  %p55_p3 = scmp.ge.s32.totalorder %s53_s22, 2 }
  0x1f   : > { %p69_p4 = scmp.ne.s32.totalorder %s1961_s0, %s1957_s16  ;;  %p70_p5 = scmp.eq.s32.totalorder %s1973_s19, 0 }
  0x20   : > { %p75_p6 = scmp.ne.s32.totalorder %s1957_s16, %s1953_s15  ;;  %s2693_s22 = smov (%p55_p3, %s53_s22), 0 }
  0x21   : > { %2653 = sst [smem:[#allocation28_spill]] %s2693_s22  ;;  %p2093_p7 = por %p70_p5, %p69_p4 }
  0x22   : > { %p76_p8 = scmp.eq.s32.totalorder %s2081_s20, 0  ;;  %s57_s25 = ssub.s32 %s1969_s18, %s2693_s22 }
  0x23   : > { %p237_p9 = scmp.eq.s32.totalorder %s2081_s20, 1  ;;  %p60_p10 = scmp.eq.s32.totalorder %s57_s25, 0 }
  0x24   : > { %p2101_p11 = por %p76_p8, %p75_p6  ;;  %p243_p13 = scmp.eq.s32.totalorder %s1382_s21, 1 }
  0x25   : > { %p2105_p12 = por %p237_p9, %p69_p4  ;;  %p1563_p2 = scmp.lt.s32.totalorder %s1973_s19, 2 }
  0x26   : > { %s2655_s26 = scalar_select %p2101_p11, 1, 0 }
  0x27   : > { %s2656_s27 = scalar_select %p2105_p12, 1, 0 }
  0x28   : > { %s2110_s28 = scalar_select %p60_p10, %s1961_s0, %s62_s23  }
  0x29   : > { %p2112_p0 = por %p243_p13, %p75_p6  ;;  %s2119_s30 = sand.u32 1, %s1961_s0  }
  0x2a   : > { %2657 = sst [smem:[#allocation29_spill]] %s2110_s28  ;;  %s2122_s9 = sshll.u32 %s2119_s30, 4 }
  0x2b   : > { %s2658_s29 = scalar_select %p2112_p0, 1, 0 }
  0x2c   : > { %s2125_s10 = sshll.u32 %s1969_s18, 8  ;;  %p2129_p3 = pnand %p1563_p2, %p2093_p7 }
  0x2d   : > { %2659 = sst [smem:[#allocation30_spill]] %s2658_s29  ;;  %s2637_s12 = sand.u32 1, %s1973_s19  }
  0x2e   : > { %s2661_s2 = sld [smem:[#allocation32_spill]]  ;;  %s317_s23 = scalar_lea.vmem [#allocation7], %s2122_s9 }
  0x2f   : > { %s324_s25 = sshll.u32 %s317_s23, 4  ;;  %s2147_s24 = scalar_lea.sflag [#allocation8], %s2637_s12  ;;  %s2142_s25 = int_to_ptr.vmem [resolvable:$true] %s324_s25 }
  0x30   : > { %p2153_p7 = pneg %p2129_p3 }
  0x34   : > { %s2138_s21 = scalar_lea.hbm %s2661_s2, %s2125_s10  ;;  %s1670_s28 = scalar_lea.hbm %s2661_s2, 512 }
  0x35   : > { %s1665_s22 = scalar_lea.hbm %s2138_s21, 256  ;;  %p1671_p10 = scmp.lt.u32.totalorder %s2138_s21, %s2661_s2 }
  0x36   : > { %p1666_p6 = scmp.ne.s32.totalorder %s2138_s21, %s1665_s22  ;;  %p1672_p13 = scmp.lt.u32.totalorder %s1670_s28, %s1665_s22 }
  0x37   : > { %p1674_p1 = scmp.lt.u32.totalorder %s1665_s22, %s2138_s21 }
  0x38   : > { %p1668_p8 = pnand %p2153_p7, %p1666_p6  ;;  %p1673_p2 = por %p1672_p13, %p1671_p10 }
  0x3a   : > { %p1669_p9 = pneg %p1668_p8  ;;  %p1675_p4 = por %p1674_p1, %p1673_p2 }
  0x3c   : > { %p1676_p5 = pnand %p1675_p4, %p1669_p9 }
  0x3e   : > { %1679 = shalt.err (!%p1676_p5)
}
  0x3f   : > { %s1680_s12 = scalar_lea.vmem %s2142_s25, 256  ;;  %s1976_s14 = smov [#allocation7]  }
  0x40   : > { %p1681_p6 = scmp.ne.s32.totalorder %s2142_s25, %s1680_s12  ;;  %s1685_s23 = sshll.u32 %s1976_s14, 4  ;;  %s1686_s23 = int_to_ptr.vmem [resolvable:$false] %s1685_s23 }
  0x41   : > { %s1687_s0 = scalar_lea.vmem %s1686_s23, 512  ;;  %p1688_p12 = scmp.lt.s32.totalorder %s2142_s25, %s1686_s23 }
  0x42   : > { %p1683_p8 = pnand %p1681_p6, %p2153_p7  ;;  %p1689_p11 = scmp.lt.s32.totalorder %s1687_s0, %s1680_s12 }
  0x44   : > { %p1684_p0 = pneg %p1683_p8  ;;  %p1690_p10 = por %p1689_p11, %p1688_p12 }
  0x46   : > { %p1691_p13 = pnand %p1690_p10, %p1684_p0 }
  0x48   : > { %1694 = shalt.err (!%p1691_p13)
}
  0x49   : > { %s2642_s22 = smov 64   ;;  %s2644_s28 = smov 4  }
  0x4a   : > { %1543 = dma.hbm_to_vmem [thread:$0]  (!%p2129_p3), %s2138_s21, 256, %s2142_s25, %s2147_s24, %s2642_s22, %s2642_s22, %s2644_s28  }
  0x4b   : > { %p2663_p11 = scmp.lt.s32.totalorder %s1973_s19, 3  ;;  %p2664_p12 = scmp.ge.s32.totalorder %s1973_s19, 1 }
  0x4c   : > { %s1394_s12 = sshll.u32 %s2119_s30, 3  ;;  %s1434_s14 = sshll.u32 %s1969_s18, 7 }
  0x4d   : > { %p2184_p0 = pnand %p2664_p12, %p2663_p11  ;;  %s2193_s2 = scalar_lea.hbm %s2629_s4, %s1434_s14 }
  0x4e   : > { %s359_s15 = scalar_lea.vmem [#allocation10], %s1394_s12  ;;  %s2666_s21 = sand.u32 1, %s1973_s19  }
  0x4f   : > { %s2665_s29 = scalar_select %p2184_p0, 1, 0 }
  0x50   : > { %s367_s7 = sshll.u32 %s359_s15, 4  ;;  %s2199_s25 = scalar_lea.sflag [#allocation11], %s2666_s21  ;;  %s2195_s7 = int_to_ptr.vmem [resolvable:$true] %s367_s7 }
  0x51   : > { %s1695_s22 = scalar_lea.hbm %s2193_s2, 128  ;;  %s1700_s14 = scalar_lea.hbm %s2629_s4, 256 }
  0x52   : > { %p1696_p1 = scmp.ne.s32.totalorder %s2193_s2, %s1695_s22  ;;  %p1701_p9 = scmp.lt.u32.totalorder %s2193_s2, %s2629_s4 }
  0x53   : > { %p1702_p2 = scmp.lt.u32.totalorder %s1700_s14, %s1695_s22  ;;  %p1704_p8 = scmp.lt.u32.totalorder %s1695_s22, %s2193_s2 }
  0x54   : > { %p1698_p4 = pnand %p1696_p1, %p2153_p7 }
  0x55   : > { %p1703_p6 = por %p1702_p2, %p1701_p9 }
  0x56   : > { %p1699_p5 = pneg %p1698_p4 }
  0x57   : > { %p1705_p10 = por %p1704_p8, %p1703_p6 }
  0x59   : > { %p1706_p13 = pnand %p1705_p10, %p1699_p5 }
  0x5b   : > { %1709 = shalt.err (!%p1706_p13)
}
  0x5c   : > { %s1710_s15 = scalar_lea.vmem %s2195_s7, 128  ;;  %s1979_s28 = smov [#allocation10]  }
  0x5d   : > { %p1711_p11 = scmp.ne.s32.totalorder %s2195_s7, %s1710_s15  ;;  %s1715_s12 = sshll.u32 %s1979_s28, 4  ;;  %s1716_s12 = int_to_ptr.vmem [resolvable:$false] %s1715_s12 }
  0x5e   : > { %s1717_s18 = scalar_lea.vmem %s1716_s12, 256  ;;  %p1718_p4 = scmp.lt.s32.totalorder %s2195_s7, %s1716_s12 }
  0x5f   : > { %p1713_p12 = pnand %p1711_p11, %p2153_p7  ;;  %p1719_p0 = scmp.lt.s32.totalorder %s1717_s18, %s1710_s15 }
  0x61   : > { %p1714_p1 = pneg %p1713_p12  ;;  %p1720_p9 = por %p1719_p0, %p1718_p4 }
  0x63   : > { %p1721_p2 = pnand %p1720_p9, %p1714_p1 }
  0x65   : > { %1724 = shalt.err (!%p1721_p2)
}
  0x66   : > { %s1980_s22 = smov 32   ;;  %s1981_s21 = smov 2  }
  0x67   : > { %1549 = dma.hbm_to_vmem [thread:$0]  (!%p2129_p3), %s2193_s2, 128, %s2195_s7, %s2199_s25, %s1980_s22, %s1980_s22, %s1981_s21  }
  0x68   : > { %s2667_s1 = sld [smem:[#allocation31_spill]]  ;;  %s295_s15 = scalar_lea.vmem [#allocation4], %s2122_s9 }
  0x69   : > { %s303_s28 = sshll.u32 %s295_s15, 4  ;;  %s292_s12 = scalar_lea.sflag [#allocation5], %s2119_s30  ;;  %s2230_s28 = int_to_ptr.vmem [resolvable:$true] %s303_s28 }
  0x6e   : > { %s2227_s0 = scalar_lea.hbm %s2667_s1, %s2125_s10  ;;  %s1730_s22 = scalar_lea.hbm %s2667_s1, 512 }
  0x6f   : > { %s1725_s18 = scalar_lea.hbm %s2227_s0, 256  ;;  %p1731_p8 = scmp.lt.u32.totalorder %s2227_s0, %s2667_s1 }
  0x70   : > { %p1726_p0 = scmp.ne.s32.totalorder %s2227_s0, %s1725_s18  ;;  %p1732_p10 = scmp.lt.u32.totalorder %s1730_s22, %s1725_s18 }
  0x71   : > { %p1734_p11 = scmp.lt.u32.totalorder %s1725_s18, %s2227_s0 }
  0x72   : > { %p1728_p5 = pnand %p1726_p0, %p2153_p7  ;;  %p1733_p13 = por %p1732_p10, %p1731_p8 }
  0x74   : > { %p1729_p6 = pneg %p1728_p5  ;;  %p1735_p12 = por %p1734_p11, %p1733_p13 }
  0x76   : > { %p1736_p1 = pnand %p1735_p12, %p1729_p6 }
  0x78   : > { %1739 = shalt.err (!%p1736_p1)
}
  0x79   : > { %s1740_s14 = scalar_lea.vmem %s2230_s28, 256  ;;  %s1982_s15 = smov [#allocation4]  }
  0x7a   : > { %p1741_p4 = scmp.ne.s32.totalorder %s2230_s28, %s1740_s14  ;;  %s1745_s2 = sshll.u32 %s1982_s15, 4  ;;  %s1746_s2 = int_to_ptr.vmem [resolvable:$false] %s1745_s2 }
  0x7b   : > { %s1747_s7 = scalar_lea.vmem %s1746_s2, 512  ;;  %p1748_p0 = scmp.lt.s32.totalorder %s2230_s28, %s1746_s2 }
  0x7c   : > { %p1743_p9 = pnand %p1741_p4, %p2153_p7  ;;  %p1749_p5 = scmp.lt.s32.totalorder %s1747_s7, %s1740_s14 }
  0x7e   : > { %p1744_p2 = pneg %p1743_p9  ;;  %p1750_p8 = por %p1749_p5, %p1748_p0 }
  0x80   : > { %p1751_p10 = pnand %p1750_p8, %p1744_p2 }
  0x82   : > { %1754 = shalt.err (!%p1751_p10)
}
  0x83   : > { %s2668_s18 = smov 4   ;;  %s2669_s22 = smov 64  }
  0x84   : > { %1540 = dma.hbm_to_vmem [thread:$0]  (!%p2129_p3), %s2227_s0, 256, %s2230_s28, %s292_s12, %s2669_s22, %s2669_s22, %s2668_s18  }
  0x85   : > { %s2263_s14 = scalar_lea.hbm %s2628_s3, %s2125_s10  ;;  %s338_s15 = scalar_lea.vmem [#allocation9], %s2122_s9 }
  0x86   : > { %s345_s2 = sshll.u32 %s338_s15, 4  ;;  %s1755_s7 = scalar_lea.hbm %s2263_s14, 256  ;;  %s2266_s2 = int_to_ptr.vmem [resolvable:$true] %s345_s2 }
  0x87   : > { %p1756_p6 = scmp.ne.s32.totalorder %s2263_s14, %s1755_s7  ;;  %s1760_s28 = scalar_lea.hbm %s2628_s3, 512 }
  0x88   : > { %p1761_p12 = scmp.lt.u32.totalorder %s2263_s14, %s2628_s3  ;;  %p1762_p1 = scmp.lt.u32.totalorder %s1760_s28, %s1755_s7 }
  0x89   : > { %p1758_p13 = pnand %p1756_p6, %p2153_p7  ;;  %p1764_p9 = scmp.lt.u32.totalorder %s1755_s7, %s2263_s14 }
  0x8a   : > { %p1763_p4 = por %p1762_p1, %p1761_p12 }
  0x8b   : > { %p1759_p11 = pneg %p1758_p13 }
  0x8c   : > { %p1765_p2 = por %p1764_p9, %p1763_p4 }
  0x8e   : > { %p1766_p0 = pnand %p1765_p2, %p1759_p11 }
  0x90   : > { %1769 = shalt.err (!%p1766_p0)
}
  0x91   : > { %s1770_s23 = scalar_lea.vmem %s2266_s2, 256  ;;  %s1983_s1 = smov [#allocation9]  }
  0x92   : > { %p1771_p5 = scmp.ne.s32.totalorder %s2266_s2, %s1770_s23  ;;  %s1775_s15 = sshll.u32 %s1983_s1, 4  ;;  %s1776_s15 = int_to_ptr.vmem [resolvable:$false] %s1775_s15 }
  0x93   : > { %s1777_s0 = scalar_lea.vmem %s1776_s15, 512  ;;  %p1778_p6 = scmp.lt.s32.totalorder %s2266_s2, %s1776_s15 }
  0x94   : > { %p1773_p8 = pnand %p1771_p5, %p2153_p7  ;;  %p1779_p13 = scmp.lt.s32.totalorder %s1777_s0, %s1770_s23 }
  0x96   : > { %p1774_p10 = pneg %p1773_p8  ;;  %p1780_p12 = por %p1779_p13, %p1778_p6 }
  0x98   : > { %p1781_p1 = pnand %p1780_p12, %p1774_p10 }
  0x9a   : > { %1784 = shalt.err (!%p1781_p1)
}
  0x9b   : > { %1546 = dma.hbm_to_vmem [thread:$0]  (!%p2129_p3), %s2263_s14, 256, %s2266_s2, %s2147_s24, %s2669_s22, %s2669_s22, %s2668_s18  }
  0x9c   : > { %s2297_s12 = scalar_lea.hbm %s2630_s5, %s2125_s10  ;;  %s381_s21 = scalar_lea.vmem [#allocation12], %s2122_s9 }
  0x9d   : > { %s389_s23 = sshll.u32 %s381_s21, 4  ;;  %s1785_s1 = scalar_lea.hbm %s2297_s12, 256  ;;  %s2300_s23 = int_to_ptr.vmem [resolvable:$true] %s389_s23 }
  0x9e   : > { %p1786_p11 = scmp.ne.s32.totalorder %s2297_s12, %s1785_s1  ;;  %s1790_s14 = scalar_lea.hbm %s2630_s5, 512 }
  0x9f   : > { %p1791_p2 = scmp.lt.u32.totalorder %s2297_s12, %s2630_s5  ;;  %p1792_p0 = scmp.lt.u32.totalorder %s1790_s14, %s1785_s1 }
  0xa0   : > { %p1788_p4 = pnand %p1786_p11, %p2153_p7  ;;  %p1794_p8 = scmp.lt.u32.totalorder %s1785_s1, %s2297_s12 }
  0xa1   : > { %p1793_p5 = por %p1792_p0, %p1791_p2 }
  0xa2   : > { %p1789_p9 = pneg %p1788_p4 }
  0xa3   : > { %p1795_p10 = por %p1794_p8, %p1793_p5 }
  0xa5   : > { %p1796_p6 = pnand %p1795_p10, %p1789_p9 }
  0xa7   : > { %1799 = shalt.err (!%p1796_p6)
}
  0xa8   : > { %s1800_s7 = scalar_lea.vmem %s2300_s23, 256  ;;  %s1984_s28 = smov [#allocation12]  }
  0xa9   : > { %p1801_p13 = scmp.ne.s32.totalorder %s2300_s23, %s1800_s7  ;;  %s1805_s21 = sshll.u32 %s1984_s28, 4  ;;  %s1806_s21 = int_to_ptr.vmem [resolvable:$false] %s1805_s21 }
  0xaa   : > { %s1807_s15 = scalar_lea.vmem %s1806_s21, 512  ;;  %p1808_p11 = scmp.lt.s32.totalorder %s2300_s23, %s1806_s21 }
  0xab   : > { %p1803_p12 = pnand %p1801_p13, %p2153_p7  ;;  %p1809_p4 = scmp.lt.s32.totalorder %s1807_s15, %s1800_s7 }
  0xad   : > { %p1804_p1 = pneg %p1803_p12  ;;  %p1810_p2 = por %p1809_p4, %p1808_p11 }
  0xaf   : > { %p1811_p0 = pnand %p1810_p2, %p1804_p1 }
  0xb1   : > { %1814 = shalt.err (!%p1811_p0)
}
  0xb2   : > { %1552 = dma.hbm_to_vmem [thread:$0]  (!%p2129_p3), %s2297_s12, 256, %s2300_s23, %s2199_s25, %s2669_s22, %s2669_s22, %s2668_s18  }
  0xb3   : > { %s2331_s14 = scalar_lea.hbm %s2631_s6, %s2125_s10  ;;  %s403_s2 = scalar_lea.vmem [#allocation13], %s2122_s9 }
  0xb4   : > { %s411_s0 = sshll.u32 %s403_s2, 4  ;;  %s400_s7 = scalar_lea.sflag [#allocation14], %s2119_s30  ;;  %s2334_s0 = int_to_ptr.vmem [resolvable:$true] %s411_s0 }
  0xb5   : > { %s1815_s28 = scalar_lea.hbm %s2331_s14, 256  ;;  %s1820_s23 = scalar_lea.hbm %s2631_s6, 512 }
  0xb6   : > { %p1816_p9 = scmp.ne.s32.totalorder %s2331_s14, %s1815_s28  ;;  %p1821_p10 = scmp.lt.u32.totalorder %s2331_s14, %s2631_s6 }
  0xb7   : > { %p1822_p6 = scmp.lt.u32.totalorder %s1820_s23, %s1815_s28  ;;  %p1824_p12 = scmp.lt.u32.totalorder %s1815_s28, %s2331_s14 }
  0xb8   : > { %p1818_p5 = pnand %p1816_p9, %p2153_p7 }
  0xb9   : > { %p1823_p13 = por %p1822_p6, %p1821_p10 }
  0xba   : > { %p1819_p8 = pneg %p1818_p5 }
  0xbb   : > { %p1825_p1 = por %p1824_p12, %p1823_p13 }
  0xbd   : > { %p1826_p11 = pnand %p1825_p1, %p1819_p8 }
  0xbf   : > { %1829 = shalt.err (!%p1826_p11)
}
  0xc0   : > { %s1830_s9 = scalar_lea.vmem %s2334_s0, 256  ;;  %s1985_s15 = smov [#allocation13]  }
  0xc1   : > { %p1831_p4 = scmp.ne.s32.totalorder %s2334_s0, %s1830_s9  ;;  %s1835_s1 = sshll.u32 %s1985_s15, 4  ;;  %s1836_s1 = int_to_ptr.vmem [resolvable:$false] %s1835_s1 }
  0xc2   : > { %s1837_s24 = scalar_lea.vmem %s1836_s1, 512  ;;  %p1838_p9 = scmp.lt.s32.totalorder %s2334_s0, %s1836_s1 }
  0xc3   : > { %p1833_p2 = pnand %p1831_p4, %p2153_p7  ;;  %p1839_p5 = scmp.lt.s32.totalorder %s1837_s24, %s1830_s9 }
  0xc5   : > { %p1834_p0 = pneg %p1833_p2  ;;  %p1840_p10 = por %p1839_p5, %p1838_p9 }
  0xc7   : > { %p1841_p6 = pnand %p1840_p10, %p1834_p0 }
  0xc9   : > { %1844 = shalt.err (!%p1841_p6)
}
  0xca   : > { %1555 = dma.hbm_to_vmem [thread:$0]  (!%p2129_p3), %s2331_s14, 256, %s2334_s0, %s400_s7, %s2669_s22, %s2669_s22, %s2668_s18  }
  0xcb   : > { %p2670_p7 = scmp.ne.s32.totalorder %s2665_s29, 0 }
  0xcc   : > { %s2366_s13 = sand.u32 (!%p2670_p7), 1, %s1957_s16   ;;  %p2671_p8 = scmp.ne.s32.totalorder (!%p2670_p7), %s2655_s26, 0 }
  0xcd   : > { %423 = sbr.rel (%p2670_p7) target bundleno = 1323 (0x52b), region = 44  ;;  %s2369_s2 = sshll.u32 (!%p2670_p7), %s2366_s13, 4 }
  0xce   : > { %s426_s11 = scalar_lea.sflag (!%p2670_p7), [#allocation5], %s2366_s13  ;;  %s2373_s28 = scalar_lea.vmem (!%p2670_p7), [#allocation4], %s2369_s2 }
  0xd4   : > { %1928 = dma.done.wait (%p2671_p8), %s426_s11, 256  }
  0xd5   : > { %1930 = vsyncadd (%p2671_p8), %s426_s11, 4294967040  ;;  %s434_s30 = sand.u32 1, %s2081_s20   ;;  %s2381_s18 = scalar_lea.vmem [#allocation7], %s2369_s2 }
  0xd6   : > { %s435_s29 = scalar_lea.sflag [#allocation8], %s434_s30 }
  0xd7   : > { %1932 = dma.done.wait (%p2671_p8), %s435_s29, 512  }
  0xd8   : > { %1934 = vsyncadd (%p2671_p8), %s435_s29, 4294966784  ;;  %s1407_s22 = sshll.u32 %s2366_s13, 3  ;;  %s2389_s14 = scalar_lea.vmem [#allocation9], %s2369_s2 }
  0xd9   : > { %s453_s0 = scalar_lea.sflag [#allocation11], %s434_s30  ;;  %s2391_s7 = scalar_lea.vmem [#allocation10], %s1407_s22 }
  0xda   : > { %1936 = dma.done.wait (%p2671_p8), %s453_s0, 384  }
  0xdb   : > { %1938 = vsyncadd (%p2671_p8), %s453_s0, 4294966912  ;;  %s465_s20 = scalar_lea.vmem [#allocation12], %s2369_s2  ;;  %s471_s25 = scalar_lea.sflag [#allocation14], %s2366_s13 }
  0xdc   : > { %s474_s12 = scalar_lea.vmem [#allocation13], %s2369_s2 }
  0xdd   : > { %1940 = dma.done.wait (%p2671_p8), %s471_s25, 256  }
  0xde   : > { %1942 = vsyncadd (%p2671_p8), %s471_s25, 4294967040  ;;  %v1986_v0 = vmov 0.0   ;;  %vm1987_vm0 = vmmov 0   ;;  %vm571_vm1 = vcmask 261120   ;;  %v555_v1 = vld [vmem:[%s2381_s18] sm:$0xf] }
  0xdf   : > { %1473 = vmatprep.subr.bf16.mxu0 %v1986_v0  ;;  %1479 = vmatprep.subr.bf16.mxu1 %v1986_v0  ;;  %v556_v2 = vld [vmem:[%s2381_s18 + $0x4] sm:$0xf]  ;;  %v576_v3 = vsel %vm571_vm1, %v555_v1, 0  ;;  %v547_v5 = vld [vmem:[%s2373_s28] sm:$0xf]  ;;  %v1988_v19 = vmov 0  }
  0xe0   : > { %1475 = vmatprep.mubr.msk.bf16.mxu0 %vm1987_vm0, %v1986_v0  ;;  %1481 = vmatprep.mubr.msk.bf16.mxu1 %vm1987_vm0, %v1986_v0  ;;  %v622_v4 = vsel %vm571_vm1, %v556_v2, 0  ;;  %v548_v6 = vld [vmem:[%s2373_s28 + $0x4] sm:$0xf]  ;;  %v557_v7 = vld [vmem:[%s2381_s18 + $0x8] sm:$0xf]  ;;  %vm772_vm8 = vcmask 64512  }
  0xe1   : > { %1474 = vmatpush3.bf16.xpose.msra.mxu0 %v576_v3  ;;  %1480 = vmatpush3.bf16.xpose.msra.mxu1 %v622_v4  ;;  %v558_v8 = vld [vmem:[%s2381_s18 + $0xc] sm:$0xf]  ;;  %v551_v9 = vmul.bf16 1043676725, %v547_v5  ;;  %v552_v10 = vmul.bf16 1043676725, %v548_v6 }
  0xe2   : > { %1485 = vmatprep.subr.bf16.mxu0 %v1986_v0  ;;  %1491 = vmatprep.subr.bf16.mxu1 %v1986_v0  ;;  %v668_v11 = vsel %vm571_vm1, %v557_v7, 0  ;;  %v714_v12 = vsel %vm571_vm1, %v558_v8, 0  ;;  %v549_v13 = vld [vmem:[%s2373_s28 + $0x8] sm:$0xf]  ;;  %v550_v14 = vld [vmem:[%s2373_s28 + $0xc] sm:$0xf] }
  0xe3   : > { %v553_v15 = vmul.bf16 1043676725, %v549_v13  ;;  %v554_v16 = vmul.bf16 1043676725, %v550_v14  ;;  %v563_v17 = vld [vmem:[%s2391_s7] sm:$0x3] }
  0xe4   : > { %v564_v18 = vld [vmem:[%s2391_s7 + $0x2] sm:$0x3]  ;;  %vm567_vm2 = vnez %v563_v17  ;;  %v565_v22 = vld [vmem:[%s2391_s7 + $0x4] sm:$0x3]  ;;  %v566_v23 = vld [vmem:[%s2391_s7 + $0x6] sm:$0x3] }
  0xe5   : > { %vm568_vm3 = vnez %v564_v18  ;;  %v756_v20 = vsel %vm567_vm2, 16843009, %v1988_v19  ;;  %vm569_vm4 = vnez %v565_v22  ;;  %vm570_vm5 = vnez %v566_v23  ;;  %s1416_s26 = sld [smem:[#allocation3 + $0x1]]  ;;  %s817_s23 = sld [smem:[#allocation3]]  ;;  %v1440_v17 = vld [vmem:[%s474_s12] sm:$0xff]  }
  0xe6   : > { %v757_v21 = vsel %vm568_vm3, 16843009, %v1988_v19  ;;  %v760_v24 = vunpack.c.0.s8 %v756_v20  ;;  %v758_v28 = vsel %vm569_vm4, 16843009, %v1988_v19  ;;  %v759_v29 = vsel %vm570_vm5, 16843009, %v1988_v19 }
  0xe7   : > { %v761_v25 = vunpack.c.0.s8 %v757_v21  ;;  %v762_v39 = vunpack.c.0.s8 %v758_v28  ;;  %v763_v40 = vunpack.c.0.s8 %v759_v29  ;;  %s1417_s10 = sld [smem:[#allocation3 + $0x2]]  ;;  %v1448_v18 = vld [vmem:[%s465_s20] sm:$0xff]   ;;  %v1441_v20 = vunpack.c.l.bf16 %v1440_v17  ;;  %s1418_s21 = sld [smem:[#allocation3 + $0x3]] }
  0xe8   : > { %1476 = vmatmul.mubr.msk.bf16.vlgmr.msra.gmra.mrb[0].mxu0 %vm571_vm1, %v551_v9  ;;  %1482 = vmatmul.mubr.msk.bf16.vlgmr.msra.gmra.mrb[0].mxu1 %vm571_vm1, %v552_v10  ;;  %vm2442_vm6 = vcmp.ne.s32.totalorder %v760_v24, 0  ;;  %v1449_v22 = vunpack.c.l.bf16 %v1448_v18  ;;  %vm924_vm11 = vcmask 1043456   ;;  %s1410_s9 = sshll.u32 %s2366_s13, 5  ;;  %s1437_s24 = sshll.u32 %s1965_s17, 9 }
  0xe9   : > { %1486 = vmatpush3.bf16.xpose.msra.mxu0 %v668_v11  ;;  %1492 = vmatpush3.bf16.xpose.msra.mxu1 %v714_v12  ;;  %vm2446_vm7 = vcmp.ne.s32.totalorder %v761_v25, 0  ;;  %vm2456_vm9 = vcmp.ne.s32.totalorder %v762_v39, 0  ;;  %vm2460_vm10 = vcmp.ne.s32.totalorder %v763_v40, 0  ;;  %s534_s15 = scalar_lea.vmem [#allocation16], %s1410_s9  ;;  %s2531_s28 = scalar_lea.hbm %s2633_s8, %s1437_s24 }
  0xea   : > { %1487 = vmatprep.mubr.msk.bf16.mxu0 %vm1987_vm0, %v1986_v0  ;;  %1493 = vmatprep.mubr.msk.bf16.mxu1 %vm1987_vm0, %v1986_v0  ;;  %s1147_s1 = sshll.u32 %s534_s15, 4  ;;  %s1116_s30 = scalar_lea.sflag [#allocation17], %s2366_s13  ;;  %s2524_s1 = int_to_ptr.vmem [resolvable:$true] %s1147_s1 }
  0xeb   : > { %1497 = vmatprep.subr.bf16.mxu0 %v1986_v0  ;;  %1503 = vmatprep.subr.bf16.mxu1 %v1986_v0  ;;  %v834_v21 = vstv %s1416_s26  ;;  %v821_v24 = vstv %s817_s23  ;;  %s1845_s29 = scalar_lea.vmem %s2524_s1, 512  ;;  %p2680_p13 = scmp.ne.s32.totalorder %s2656_s27, 0 }
  0xec   : > { %p1846_p3 = scmp.ne.s32.totalorder %s2524_s1, %s1845_s29  ;;  %s1989_s18 = smov [#allocation16]  }
  0xed   : > { %v851_v25 = vstv %s1417_s10  ;;  %s1849_s22 = sshll.u32 %s1989_s18, 4  ;;  %s1850_s22 = int_to_ptr.vmem [resolvable:$false] %s1849_s22 }
  0xee   : > { %p1847_p12 = pnand %p1846_p3, %p2680_p13  ;;  %p1852_p11 = scmp.lt.s32.totalorder %s2524_s1, %s1850_s22 }
  0xf0   : > { %1488 = vmatmul.mubr.msk.bf16.vlgmr.msra.gmra.mrb[4].mxu0 %vm571_vm1, %v553_v15  ;;  %1494 = vmatmul.mubr.msk.bf16.vlgmr.msra.gmra.mrb[4].mxu1 %vm571_vm1, %v554_v16  ;;  %p1848_p1 = pneg %p1847_p12 }
  0xf1   : > { %1499 = vmatprep.mubr.msk.bf16.mxu0 %vm1987_vm0, %v1986_v0  ;;  %1505 = vmatprep.mubr.msk.bf16.mxu1 %vm1987_vm0, %v1986_v0 }
 0x1bb   : > { %v612_v30 = vpop.f32.mrb[0].mxu0  ;;  %v658_v31 = vpop.f32.mrb[0].mxu1 }
 0x1bc   : > { %v768_v32 = vsel %vm2442_vm6, -1e+09, %v612_v30  ;;  %v1477_v33 = vpop.f32.mrb[1].mxu0  ;;  %v769_v34 = vsel %vm2446_vm7, -1e+09, %v658_v31  ;;  %v1483_v35 = vpop.f32.mrb[1].mxu1  ;;  %v835_v30 = vmul.f32 %v1441_v20, %v834_v21  ;;  %v1442_v31 = vunpack.c.h.bf16 %v1440_v17 }
 0x1bd   : > { %v615_v36 = vpop.f32.mrb[2].mxu0  ;;  %v773_v37 = vsel %vm772_vm8, %v768_v32, -inf  ;;  %v661_v38 = vpop.f32.mrb[2].mxu1  ;;  %v776_v43 = vsel %vm772_vm8, %v769_v34, -inf  ;;  %v1450_v35 = vunpack.c.h.bf16 %v1448_v18 }
 0x1be   : > { %774 = vmax.xlane.f32.xlu0 %v773_v37  ;;  %v1478_v41 = vpop.f32.mrb[3].mxu0  ;;  %v1484_v42 = vpop.f32.mrb[3].mxu1  ;;  %v1456_v36 = vld [vmem:[%s465_s20 + $0x8] sm:$0xff]  }
 0x1bf   : > { %v836_v41 = vmul.f32 %v1442_v31, %v834_v21  ;;  %v860_v42 = vstv %s1418_s21 }
 0x1c2   : > { %777 = vmax.xlane.f32.xlu0 %v776_v43  ;;  %v1453_v43 = vunpack.c.l.bf16 %v1456_v36 }
 0x1c3   : > { %v704_v46 = vpop.f32.mrb[4].mxu0  ;;  %v750_v47 = vpop.f32.mrb[4].mxu1 }
 0x1c4   : > { %v770_v48 = vsel %vm2456_vm9, -1e+09, %v704_v46  ;;  %v1489_v49 = vpop.f32.mrb[5].mxu0  ;;  %v771_v50 = vsel %vm2460_vm10, -1e+09, %v750_v47  ;;  %v1495_v51 = vpop.f32.mrb[5].mxu1 }
 0x1c5   : > { %v707_v52 = vpop.f32.mrb[6].mxu0  ;;  %v779_v53 = vsel %vm772_vm8, %v770_v48, -inf  ;;  %v753_v54 = vpop.f32.mrb[6].mxu1  ;;  %v782_v57 = vsel %vm772_vm8, %v771_v50, -inf }
 0x1c6   : > { %780 = vmax.xlane.f32.xlu1 %v779_v53  ;;  %v1490_v55 = vpop.f32.mrb[7].mxu0  ;;  %v1496_v56 = vpop.f32.mrb[7].mxu1 }
 0x1c7   : > { %v854_v55 = vmul.f32 %v1453_v43, %v851_v25 }
 0x1ca   : > { %783 = vmax.xlane.f32.xlu1 %v782_v57 }
 0x24b   : > { %v775_v58 = vpop.xlane.xlu0 %774 }
 0x24c   : > { %v785_v59 = vsub.f32 %v768_v32, %v775_v58  ;;  %v1455_v32 = vld [vmem:[%s474_s12 + $0x8] sm:$0xff]  }
 0x24d   : > { %v1445_v38 = vunpack.c.l.bf16 %v1455_v32  ;;  %v1446_v54 = vunpack.c.h.bf16 %v1455_v32 }
 0x24e   : > { %v789_v60 = vmul.f32 1.442695, %v785_v59  ;;  %v1454_v59 = vunpack.c.h.bf16 %v1456_v36  ;;  %v560_v36 = vld [vmem:[%s2389_s14 + $0x4] sm:$0xf] }
 0x24f   : > { %v778_v61 = vpop.xlane.xlu0 %777 }
 0x250   : > { %1623 = vpow2.f32 %v789_v60  ;;  %v786_v62 = vsub.f32 %v769_v34, %v778_v61  ;;  %v852_v34 = vmul.f32 %v1449_v22, %v851_v25 }
 0x252   : > { %v791_v63 = vmul.f32 1.442695, %v786_v62 }
 0x253   : > { %v781_v1 = vpop.xlane.xlu1 %780 }
 0x254   : > { %1625 = vpow2.f32 %v791_v63  ;;  %v787_v2 = vsub.f32 %v770_v48, %v781_v1  ;;  %v853_v48 = vmul.f32 %v1450_v35, %v851_v25 }
 0x256   : > { %v793_v3 = vmul.f32 1.442695, %v787_v2  ;;  %v838_v2 = vmul.f32 %v1446_v54, %v834_v21 }
 0x257   : > { %v784_v4 = vpop.xlane.xlu1 %783 }
 0x258   : > { %1627 = vpow2.f32 %v793_v3  ;;  %v788_v5 = vsub.f32 %v771_v50, %v784_v4  ;;  %v837_v50 = vmul.f32 %v1445_v38, %v834_v21 }
 0x25a   : > { %v1624_v6 = vpop.eup %1623  ;;  %v795_v7 = vmul.f32 1.442695, %v788_v5 }
 0x25b   : > { %v797_v8 = vsel %vm772_vm8, %v1624_v6, 0.0 }
 0x25c   : > { %1629 = vpow2.f32 %v795_v7  ;;  %798 = vadd.xlane.f32.xlu0 %v797_v8 }
 0x25e   : > { %v1626_v9 = vpop.eup %1625 }
 0x25f   : > { %v800_v10 = vsel %vm772_vm8, %v1626_v9, 0.0 }
 0x260   : > { %801 = vadd.xlane.f32.xlu1 %v800_v10 }
 0x262   : > { %v1628_v11 = vpop.eup %1627 }
 0x263   : > { %v803_v12 = vsel %vm772_vm8, %v1628_v11, 0.0 }
 0x264   : > { %804 = vadd.xlane.f32.xlu0 %v803_v12 }
 0x266   : > { %v1630_v13 = vpop.eup %1629 }
 0x267   : > { %v806_v14 = vsel %vm772_vm8, %v1630_v13, 0.0 }
 0x268   : > { %807 = vadd.xlane.f32.xlu1 %v806_v14 }
 0x2e9   : > { %v799_v15 = vpop.xlane.xlu0 %798 }
 0x2ea   : > { %1631 = vrcp.f32 %v799_v15 }
 0x2ed   : > { %v802_v16 = vpop.xlane.xlu1 %801 }
 0x2ee   : > { %1633 = vrcp.f32 %v802_v16 }
 0x2f1   : > { %v805_v19 = vpop.xlane.xlu0 %804 }
 0x2f2   : > { %1635 = vrcp.f32 %v805_v19 }
 0x2f4   : > { %v1632_v23 = vpop.eup %1631 }
 0x2f5   : > { %v808_v28 = vpop.xlane.xlu1 %807  ;;  %v813_v29 = vmul.f32 %v1632_v23, %v1624_v6  ;;  %v855_v6 = vmul.f32 %v1454_v59, %v851_v25 }
 0x2f6   : > { %1637 = vrcp.f32 %v808_v28 }
 0x2f7   : > { %v822_v33 = vmul.f32 %v821_v24, %v813_v29 }
 0x2f8   : > { %v1634_v37 = vpop.eup %1633 }
 0x2f9   : > { %v839_v39 = vadd.f32 %v835_v30, %v822_v33  ;;  %v814_v40 = vmul.f32 %v1634_v37, %v1626_v9  ;;  %v972_v37 = vsel %vm924_vm11, %v560_v36, 0 }
 0x2fa   : > { %1504 = vmatpush3.bf16.msra.mxu1 %v972_v37 }
 0x2fb   : > { %v856_v46 = vadd.f32 %v852_v34, %v839_v39  ;;  %v823_v47 = vmul.f32 %v821_v24, %v814_v40  ;;  %v559_v34 = vld [vmem:[%s2389_s14] sm:$0xf]  ;;  %1515 = vmatprep.subr.bf16.mxu1 %v1986_v0 }
 0x2fc   : > { %v1636_v49 = vpop.eup %1635  ;;  %v926_v35 = vsel %vm924_vm11, %v559_v34, 0 }
 0x2fd   : > { %v861_v51 = vadd.f32 %v860_v42, %v856_v46  ;;  %v840_v52 = vadd.f32 %v836_v41, %v823_v47  ;;  %v815_v53 = vmul.f32 %v1636_v49, %v1628_v11  ;;  %1498 = vmatpush3.bf16.msra.mxu0 %v926_v35 }
 0x2fe   : > { %1509 = vmatprep.subr.bf16.mxu0 %v1986_v0 }
 0x2ff   : > { %v865_v56 = vsel %vm2442_vm6, -1e+09, %v861_v51  ;;  %v857_v57 = vadd.f32 %v853_v48, %v840_v52  ;;  %v824_v58 = vmul.f32 %v821_v24, %v815_v53 }
 0x300   : > { %v1638_v60 = vpop.eup %1637  ;;  %v869_v61 = vsel %vm772_vm8, %v865_v56, -inf }
 0x301   : > { %870 = vmax.xlane.f32.xlu0 %v869_v61  ;;  %v862_v62 = vadd.f32 %v860_v42, %v857_v57  ;;  %v841_v63 = vadd.f32 %v837_v50, %v824_v58  ;;  %v816_v1 = vmul.f32 %v1638_v60, %v1630_v13  ;;  %v562_v50 = vld [vmem:[%s2389_s14 + $0xc] sm:$0xf] }
 0x302   : > { %v1064_v53 = vsel %vm924_vm11, %v562_v50, 0 }
 0x303   : > { %v866_v3 = vsel %vm2446_vm7, -1e+09, %v862_v62  ;;  %v858_v4 = vadd.f32 %v854_v55, %v841_v63  ;;  %v825_v5 = vmul.f32 %v821_v24, %v816_v1 }
 0x304   : > { %v872_v26 = vsel %vm772_vm8, %v866_v3, -inf }
 0x305   : > { %873 = vmax.xlane.f32.xlu1 %v872_v26  ;;  %v863_v7 = vadd.f32 %v860_v42, %v858_v4  ;;  %v842_v8 = vadd.f32 %v838_v2, %v825_v5 }
 0x307   : > { %v867_v9 = vsel %vm2456_vm9, -1e+09, %v863_v7  ;;  %v859_v10 = vadd.f32 %v855_v6, %v842_v8 }
 0x308   : > { %v875_v11 = vsel %vm772_vm8, %v867_v9, -inf }
 0x309   : > { %876 = vmax.xlane.f32.xlu0 %v875_v11  ;;  %v864_v12 = vadd.f32 %v860_v42, %v859_v10  ;;  %v561_v42 = vld [vmem:[%s2389_s14 + $0x8] sm:$0xf]  ;;  %s1851_s14 = scalar_lea.vmem %s1850_s22, 1024 }
 0x30a   : > { %v1018_v48 = vsel %vm924_vm11, %v561_v42, 0  ;;  %p1853_p4 = scmp.lt.s32.totalorder %s1851_s14, %s1845_s29 }
 0x30b   : > { %v868_v27 = vsel %vm2460_vm10, -1e+09, %v864_v12 }
 0x30c   : > { %v878_v13 = vsel %vm772_vm8, %v868_v27, -inf  ;;  %p1854_p2 = por %p1853_p4, %p1852_p11 }
 0x30d   : > { %879 = vmax.xlane.f32.xlu1 %v878_v13 }
 0x30e   : > { %p1855_p0 = pnand %p1854_p2, %p1848_p1 }
 0x38e   : > { %v871_v14 = vpop.xlane.xlu0 %870 }
 0x38f   : > { %v881_v15 = vsub.f32 %v865_v56, %v871_v14 }
 0x391   : > { %v885_v16 = vmul.f32 1.442695, %v881_v15 }
 0x392   : > { %v874_v17 = vpop.xlane.xlu1 %873 }
 0x393   : > { %1639 = vpow2.f32 %v885_v16  ;;  %v882_v18 = vsub.f32 %v866_v3, %v874_v17 }
 0x395   : > { %v887_v19 = vmul.f32 1.442695, %v882_v18 }
 0x396   : > { %v877_v44 = vpop.xlane.xlu0 %876 }
 0x397   : > { %1641 = vpow2.f32 %v887_v19  ;;  %v883_v20 = vsub.f32 %v867_v9, %v877_v44 }
 0x399   : > { %v889_v21 = vmul.f32 1.442695, %v883_v20 }
 0x39a   : > { %v880_v22 = vpop.xlane.xlu1 %879 }
 0x39b   : > { %1643 = vpow2.f32 %v889_v21  ;;  %v884_v23 = vsub.f32 %v868_v27, %v880_v22 }
 0x39d   : > { %v1640_v45 = vpop.eup %1639  ;;  %v891_v24 = vmul.f32 1.442695, %v884_v23 }
 0x39e   : > { %v893_v25 = vsel %vm772_vm8, %v1640_v45, 0.0 }
 0x39f   : > { %1645 = vpow2.f32 %v891_v24  ;;  %894 = vadd.xlane.f32.xlu0 %v893_v25 }
 0x3a1   : > { %v1642_v28 = vpop.eup %1641 }
 0x3a2   : > { %v896_v29 = vsel %vm772_vm8, %v1642_v28, 0.0 }
 0x3a3   : > { %897 = vadd.xlane.f32.xlu1 %v896_v29 }
 0x3a5   : > { %v1644_v30 = vpop.eup %1643 }
 0x3a6   : > { %v899_v31 = vsel %vm772_vm8, %v1644_v30, 0.0 }
 0x3a7   : > { %900 = vadd.xlane.f32.xlu0 %v899_v31 }
 0x3a9   : > { %v1646_v32 = vpop.eup %1645 }
 0x3aa   : > { %v902_v33 = vsel %vm772_vm8, %v1646_v32, 0.0 }
 0x3ab   : > { %903 = vadd.xlane.f32.xlu1 %v902_v33 }
 0x42c   : > { %v895_v38 = vpop.xlane.xlu0 %894 }
 0x42d   : > { %1647 = vrcp.f32 %v895_v38 }
 0x430   : > { %v898_v39 = vpop.xlane.xlu1 %897 }
 0x431   : > { %1649 = vrcp.f32 %v898_v39 }
 0x434   : > { %v901_v40 = vpop.xlane.xlu0 %900 }
 0x435   : > { %1651 = vrcp.f32 %v901_v40 }
 0x437   : > { %v1648_v41 = vpop.eup %1647 }
 0x438   : > { %v909_v43 = vmul.f32 %v1648_v41, %v1640_v45  ;;  %v904_v46 = vpop.xlane.xlu1 %903 }
 0x439   : > { %1653 = vrcp.f32 %v904_v46 }
 0x43a   : > { %v917_v47 = vpack.c.bf16 %v909_v43, %v909_v43  ;;  %913 = vst.msk [vmem:[%s534_s15] sm:$0xff] %vm772_vm8, %v909_v43 }
 0x43b   : > { %v1650_v49 = vpop.eup %1649 }
 0x43c   : > { %v910_v51 = vmul.f32 %v1650_v49, %v1642_v28  ;;  %1500 = vmatmul.mubr.msk.bf16.vlgmr.msra.gmra.mrb[8].mxu0 %vm772_vm8, %v917_v47 }
 0x43d   : > { %1510 = vmatpush3.bf16.msra.mxu0 %v1018_v48  ;;  %1511 = vmatprep.mubr.msk.bf16.mxu0 %vm1987_vm0, %v1986_v0 }
 0x43e   : > { %v918_v52 = vpack.c.bf16 %v910_v51, %v910_v51  ;;  %914 = vst.msk [vmem:[%s534_s15 + $0x8] sm:$0xff] %vm772_vm8, %v910_v51 }
 0x43f   : > { %v1652_v54 = vpop.eup %1651 }
 0x440   : > { %v911_v55 = vmul.f32 %v1652_v54, %v1644_v30  ;;  %1506 = vmatmul.mubr.msk.bf16.vlgmr.msra.gmra.mrb[8].mxu1 %vm772_vm8, %v918_v52 }
 0x441   : > { %1516 = vmatpush3.bf16.msra.mxu1 %v1064_v53  ;;  %1517 = vmatprep.mubr.msk.bf16.mxu1 %vm1987_vm0, %v1986_v0 }
 0x442   : > { %v919_v56 = vpack.c.bf16 %v911_v55, %v911_v55  ;;  %915 = vst.msk [vmem:[%s534_s15 + $0x10] sm:$0xff] %vm772_vm8, %v911_v55 }
 0x443   : > { %v1654_v57 = vpop.eup %1653 }
 0x444   : > { %v912_v58 = vmul.f32 %v1654_v57, %v1646_v32  ;;  %1512 = vmatmul.mubr.msk.bf16.vlgmr.msra.gmra.mrb[12].mxu0 %vm772_vm8, %v919_v56 }
 0x446   : > { %v920_v59 = vpack.c.bf16 %v912_v58, %v912_v58  ;;  %916 = vst.msk [vmem:[%s534_s15 + $0x18] sm:$0xff] %vm772_vm8, %v912_v58 }
 0x448   : > { %1518 = vmatmul.mubr.msk.bf16.vlgmr.msra.gmra.mrb[12].mxu1 %vm772_vm8, %v920_v59 }
 0x449   : > { %1858 = shalt.err (!%p1855_p0)
}
 0x44a   : > { %s1859_s0 = scalar_lea.hbm %s2531_s28, 512  ;;  %s1863_s25 = scalar_lea.hbm %s2633_s8, 1024 }
 0x44b   : > { %p1860_p9 = scmp.ne.s32.totalorder %s2531_s28, %s1859_s0  ;;  %p1864_p6 = scmp.lt.u32.totalorder %s2531_s28, %s2633_s8 }
 0x44c   : > { %p1865_p7 = scmp.lt.u32.totalorder %s1863_s25, %s1859_s0  ;;  %p1867_p3 = scmp.lt.u32.totalorder %s1859_s0, %s2531_s28 }
 0x44d   : > { %p1861_p5 = pnand %p1860_p9, %p2680_p13 }
 0x44e   : > { %p1866_p8 = por %p1865_p7, %p1864_p6 }
 0x44f   : > { %p1862_p10 = pneg %p1861_p5 }
 0x450   : > { %p1868_p12 = por %p1867_p3, %p1866_p8 }
 0x452   : > { %p1869_p1 = pnand %p1868_p12, %p1862_p10 }
 0x454   : > { %1872 = shalt.err (!%p1869_p1)
}
 0x455   : > { %s1990_s23 = smov 128   ;;  %s1991_s10 = smov 8  }
 0x456   : > { %1534 = dma.vmem_to_hbm [thread:$0]  (%p2680_p13), %s2524_s1, 512, %s2531_s28, %s1116_s30, %s1990_s23, %s1990_s23, %s1991_s10  }
 0x457   : > { %s527_s21 = scalar_lea.vmem [#allocation15], %s1410_s9  ;;  %s2681_s2 = sld [smem:[#allocation33_spill]] }
 0x458   : > { %s1130_s15 = sshll.u32 %s527_s21, 4  ;;  %s1111_s28 = scalar_lea.sflag [#allocation6], %s2366_s13  ;;  %s2565_s15 = int_to_ptr.vmem [resolvable:$true] %s1130_s15 }
 0x459   : > { %s1873_s30 = scalar_lea.vmem %s2565_s15, 512  ;;  %s1992_s29 = smov [#allocation15]  }
 0x45a   : > { %p1874_p11 = scmp.ne.s32.totalorder %s2565_s15, %s1873_s30  ;;  %s1877_s18 = sshll.u32 %s1992_s29, 4  ;;  %s1878_s18 = int_to_ptr.vmem [resolvable:$false] %s1877_s18 }
 0x45b   : > { %s1879_s17 = scalar_lea.vmem %s1878_s18, 1024  ;;  %p1880_p0 = scmp.lt.s32.totalorder %s2565_s15, %s1878_s18 }
 0x45c   : > { %p1875_p4 = pnand %p1874_p11, %p2680_p13  ;;  %p1881_p9 = scmp.lt.s32.totalorder %s1879_s17, %s1873_s30 }
 0x45d   : > { %s2572_s11 = scalar_lea.hbm %s2681_s2, %s1437_s24 }
 0x45e   : > { %p1876_p2 = pneg %p1875_p4  ;;  %p1882_p5 = por %p1881_p9, %p1880_p0 }
 0x460   : > { %p1883_p10 = pnand %p1882_p5, %p1876_p2 }
 0x50f   : > { %v962_v0 = vpop.f32.mrb[8].mxu0 }
 0x510   : > { %1106 = vst.msk [vmem:[%s527_s21] sm:$0xff] %vm571_vm1, %v962_v0  ;;  %v1501_v60 = vpop.f32.mrb[9].mxu0 }
 0x511   : > { %v965_v61 = vpop.f32.mrb[10].mxu0 }
 0x512   : > { %v1502_v62 = vpop.f32.mrb[11].mxu0 }
 0x513   : > { %v1008_v63 = vpop.f32.mrb[8].mxu1 }
 0x514   : > { %1107 = vst.msk [vmem:[%s527_s21 + $0x8] sm:$0xff] %vm571_vm1, %v1008_v63  ;;  %v1507_v1 = vpop.f32.mrb[9].mxu1 }
 0x515   : > { %v1011_v2 = vpop.f32.mrb[10].mxu1 }
 0x516   : > { %v1508_v3 = vpop.f32.mrb[11].mxu1 }
 0x517   : > { %v1054_v4 = vpop.f32.mrb[12].mxu0 }
 0x518   : > { %1108 = vst.msk [vmem:[%s527_s21 + $0x10] sm:$0xff] %vm571_vm1, %v1054_v4  ;;  %v1513_v5 = vpop.f32.mrb[13].mxu0 }
 0x519   : > { %v1057_v6 = vpop.f32.mrb[14].mxu0 }
 0x51a   : > { %v1514_v26 = vpop.f32.mrb[15].mxu0 }
 0x51b   : > { %v1100_v7 = vpop.f32.mrb[12].mxu1 }
 0x51c   : > { %1109 = vst.msk [vmem:[%s527_s21 + $0x18] sm:$0xff] %vm571_vm1, %v1100_v7  ;;  %v1519_v8 = vpop.f32.mrb[13].mxu1 }
 0x51d   : > { %v1103_v9 = vpop.f32.mrb[14].mxu1 }
 0x51e   : > { %1886 = shalt.err (!%p1883_p10)
}
 0x51f   : > { %s1887_s24 = scalar_lea.hbm %s2572_s11, 512  ;;  %s1891_s0 = scalar_lea.hbm %s2681_s2, 1024 }
 0x520   : > { %p1888_p6 = scmp.ne.s32.totalorder %s2572_s11, %s1887_s24  ;;  %p1892_p3 = scmp.lt.u32.totalorder %s2572_s11, %s2681_s2 }
 0x521   : > { %p1893_p12 = scmp.lt.u32.totalorder %s1891_s0, %s1887_s24  ;;  %p1895_p11 = scmp.lt.u32.totalorder %s1887_s24, %s2572_s11 }
 0x522   : > { %p1889_p7 = pnand %p1888_p6, %p2680_p13 }
 0x523   : > { %p1894_p1 = por %p1893_p12, %p1892_p3 }
 0x524   : > { %p1890_p8 = pneg %p1889_p7 }
 0x525   : > { %p1896_p4 = por %p1895_p11, %p1894_p1 }
 0x527   : > { %p1897_p2 = pnand %p1896_p4, %p1890_p8 }
 0x529   : > { %1900 = shalt.err (!%p1897_p2)
}
 0x52a   : > { %1533 = dma.vmem_to_hbm [thread:$0]  (%p2680_p13), %s2565_s15, 512, %s2572_s11, %s1111_s28, %s1990_s23, %s1990_s23, %s1991_s10   ;;  %v1520_v10 = vpop.f32.mrb[15].mxu1 }
 0x52b PF: > { %s2682_s25 = sld [smem:[#allocation25_spill]]  ;;  %s2683_s12 = sld [smem:[#allocation30_spill]] }
 0x52c   : > { %p2685_p9 = scmp.ge.s32.totalorder %s1973_s19, 2 }
 0x531   : > { %s1162_s26 = sand.u32 1, %s2682_s25   ;;  %p2684_p0 = scmp.ne.s32.totalorder %s2683_s12, 0 }
 0x532   : > { %s1163_s21 = scalar_lea.sflag [#allocation6], %s1162_s26 }
 0x533   : > { %p1557_p5 = pnand %p2685_p9, %p2684_p0 }
 0x535   : > { %1944 = dma.done.wait (!%p1557_p5), %s1163_s21, 512  }
 0x536   : > { %1946 = vsyncadd (!%p1557_p5), %s1163_s21, 4294966784  ;;  %s1172_s27 = scalar_lea.sflag [#allocation17], %s1162_s26 }
 0x537   : > { %1948 = dma.done.wait (!%p1557_p5), %s1172_s27, 512  }
 0x538   : > { %1950 = vsyncadd (!%p1557_p5), %s1172_s27, 4294966784  ;;  %s41_s19 = sadd.s32 1, %s1973_s19   ;;  %s2686_s13 = sld [smem:[#allocation26_spill]] }
 0x539   : > { %p38_p10 = scmp.ge.s32.totalorder %s41_s19, 4   ;;  %s2687_s0 = sld [smem:[#allocation29_spill]] }
 0x53a   : > { %s2688_s17 = sld [smem:[#allocation27_spill]]  ;;  %s2689_s18 = sld [smem:[#allocation28_spill]] }
 0x53b   : > { %s2690_s15 = smov %s1957_s16  ;;  %40 = sbr.rel (!%p38_p10) target bundleno = 27 (0x1b), region = 167 }
 0x53e   : > { %s2691_s16 = smov %s2686_s13 }
 0x542   :  { %1177 = vsyncpa [#allocation5], 1 }
 0x543   :  { %1179 = vsyncpa [#allocation5 + $0x1], 1 }
 0x544   :  { %1180 = vsyncpa [#allocation8], 1 }
 0x545   :  { %1182 = vsyncpa [#allocation8 + $0x1], 1 }
 0x546   :  { %1183 = vsyncpa [#allocation11], 1 }
 0x547   :  { %1185 = vsyncpa [#allocation11 + $0x1], 1 }
 0x548   :  { %1186 = vsyncpa [#allocation14], 1 }
 0x549   :  { %1188 = vsyncpa [#allocation14 + $0x1], 1 }
 0x54a   :  { %1189 = vsyncpa [#allocation6], 1 }
 0x54b   :  { %1191 = vsyncpa [#allocation6 + $0x1], 1 }
 0x54c   :  { %1192 = vsyncpa [#allocation17], 1 }
 0x54d   :  { %1194 = vsyncpa [#allocation17 + $0x1], 1 }

</bundles_post_ra>
